<compile_context>
chip_gen: v7x
topology: tpu7x:2x2x1
jax: 0.10.0
libtpu: 0.0.40
codegen_flags: <defaults>
</compile_context>

<pallas_src>
import functools

import jax
import jax.numpy as jnp
from jax.experimental import pallas as pl
from jax.experimental.pallas import tpu as pltpu

_MIB = 1024 * 1024


def _round_up(x, m):
    return (x + m - 1) // m * m


# ----------------------------------------------------------------------------
# Kernels
# ----------------------------------------------------------------------------
def _ffn_kernel_resident(x_ref, w1_ref, b1_ref, w2_ref, b2_ref, o_ref):
    """Weights fully VMEM-resident; single pass over the hidden dim."""
    h = jnp.dot(x_ref[...], w1_ref[...], preferred_element_type=jnp.float32)
    h = jnp.maximum(h + b1_ref[...], 0.0)
    out = jnp.dot(h.astype(w2_ref.dtype), w2_ref[...],
                  preferred_element_type=jnp.float32)
    o_ref[...] = (out + b2_ref[...]).astype(o_ref.dtype)


def _ffn_kernel_ktiled_f32out(x_ref, w1_ref, b1_ref, w2_ref, b2_ref, o_ref):
    """Hidden dim K-tiled; f32 output block doubles as the accumulator."""
    k = pl.program_id(1)
    h = jnp.dot(x_ref[...], w1_ref[...], preferred_element_type=jnp.float32)
    h = jnp.maximum(h + b1_ref[...], 0.0)
    contrib = jnp.dot(h.astype(w2_ref.dtype), w2_ref[...],
                      preferred_element_type=jnp.float32)

    @pl.when(k == 0)
    def _():
        o_ref[...] = contrib

    @pl.when(k > 0)
    def _():
        o_ref[...] += contrib

    @pl.when(k == pl.num_programs(1) - 1)
    def _():
        o_ref[...] += b2_ref[...]  # bias2 added exactly once


def _ffn_kernel_ktiled_acc(x_ref, w1_ref, b1_ref, w2_ref, b2_ref, o_ref,
                           acc_ref):
    """Hidden dim K-tiled; separate f32 scratch accumulator (non-f32 output)."""
    k = pl.program_id(1)

    @pl.when(k == 0)
    def _():
        acc_ref[...] = jnp.zeros_like(acc_ref)

    h = jnp.dot(x_ref[...], w1_ref[...], preferred_element_type=jnp.float32)
    h = jnp.maximum(h + b1_ref[...], 0.0)
    acc_ref[...] += jnp.dot(h.astype(w2_ref.dtype), w2_ref[...],
                            preferred_element_type=jnp.float32)

    @pl.when(k == pl.num_programs(1) - 1)
    def _():
        o_ref[...] = (acc_ref[...] + b2_ref[...]).astype(o_ref.dtype)


# ----------------------------------------------------------------------------
# Tile / VMEM selection
# ----------------------------------------------------------------------------
def _vmem_capacity_bytes():
    try:
        cap = int(pltpu.get_tpu_info().vmem_capacity_bytes)
        if cap > 0:
            return cap
    except Exception:
        pass
    return 64 * _MIB  # conservative fallback (v7x-sized)


def _vmem_budget():
    cap = _vmem_capacity_bytes()
    if cap >= 96 * _MIB:          # v5e / v6e class (128 MiB physical)
        budget = cap - 24 * _MIB
    else:                         # v7x class (64 MiB per TC)
        budget = int(cap * 0.80)
    return budget, cap


def _select_tiles(m, dim_p, hid_p, out_itemsize, budget):
    """Returns (k_tiled, tile_m, tile_h, est_vmem_bytes)."""
    m16 = _round_up(max(m, 1), 16)
    # Arithmetic-intensity target: tile_m flop/byte of weight streaming.
    # 128 MiB chips (v6e ridge ~680) -> 1024; 64 MiB chips (v7x ridge ~310) -> 512.
    gen_target = 1024 if budget >= 96 * _MIB else 512
    target_m = max(16, min(gen_target, m16))

    def resident_bytes(tm):
        return (2 * tm * dim_p * 2            # x tile (bf16, double-buffered)
                + 2 * dim_p * hid_p * 2       # W1 (count 2x to be safe)
                + 2 * hid_p * dim_p * 2       # W2
                + 2 * hid_p * 4 + 2 * dim_p * 4      # biases
                + 2 * tm * dim_p * out_itemsize)     # out tile

    def ktiled_bytes(tm, th):
        acc = 0 if out_itemsize == 4 else tm * dim_p * 4
        return (2 * tm * dim_p * 2
                + 2 * dim_p * th * 2          # W1 chunk
                + 2 * th * dim_p * 2          # W2 chunk
                + 2 * th * 4 + 2 * dim_p * 4
                + 2 * tm * dim_p * out_itemsize
                + acc)

    # Path A: weights fully resident, no hidden grid axis (weights DMA'd once).
    rb = resident_bytes(target_m)
    if rb <= budget:
        return False, target_m, hid_p, rb

    # Path B: K-tiled hidden axis. Prefer the largest tile_m (AI lever); within
    # a tile_m, the largest tile_h that fits.
    base = (1024, 768, 512, 384, 256, 128, 64, 32, 16)
    tm_cands = [t for t in base if t <= target_m]
    if target_m not in tm_cands:
        tm_cands = [target_m] + tm_cands
    if not tm_cands:
        tm_cands = [16]
    th_cands = [c for c in (512, 384, 256, 128) if c <= hid_p and hid_p % c == 0]
    if not th_cands:
        th_cands = [hid_p]

    for tm in tm_cands:
        for th in th_cands:
            kb = ktiled_bytes(tm, th)
            if kb <= budget:
                return True, tm, th, kb
    tm, th = tm_cands[-1], th_cands[-1]
    return True, tm, th, ktiled_bytes(tm, th)


# ----------------------------------------------------------------------------
# Parameter prep (done ONCE, outside the per-call path)
# ----------------------------------------------------------------------------
def prepare_params(w1, b1, w2, b2, compute_dtype=jnp.bfloat16):
    """Cast MXU operands to compute_dtype and pad feature axes to 128 lanes.
    w1: (dim, hidden), b1: (hidden,), w2: (hidden, dim), b2: (dim,).
    Set compute_dtype=jnp.float32 to match the PyTorch f32 reference exactly."""
    dim, hidden = w1.shape
    dim_p = _round_up(dim, 128)
    hid_p = _round_up(hidden, 128)
    w1p = jnp.pad(w1.astype(compute_dtype), ((0, dim_p - dim), (0, hid_p - hidden)))
    w2p = jnp.pad(w2.astype(compute_dtype), ((0, hid_p - hidden), (0, dim_p - dim)))
    b1p = jnp.pad(b1.astype(jnp.float32), (0, hid_p - hidden)).reshape(1, hid_p)
    b2p = jnp.pad(b2.astype(jnp.float32), (0, dim_p - dim)).reshape(1, dim_p)
    return w1p, b1p, w2p, b2p


# ----------------------------------------------------------------------------
# Pallas call
# ----------------------------------------------------------------------------
@functools.partial(jax.jit,
                   static_argnames=("tile_m", "tile_h", "k_tiled", "vmem_limit"))
def _ffn_pallas(x2d, w1p, b1p, w2p, b2p, *, tile_m, tile_h, k_tiled, vmem_limit):
    m, dim = x2d.shape
    dim_p, hid_p = w1p.shape
    out_dtype = x2d.dtype
    out_itemsize = jnp.dtype(out_dtype).itemsize
    w_itemsize = jnp.dtype(w1p.dtype).itemsize

    m_p = _round_up(m, tile_m)
    num_m = m_p // tile_m
    xp = jnp.pad(x2d.astype(w1p.dtype), ((0, m_p - m), (0, dim_p - dim)))

    flops = 4 * m_p * dim_p * hid_p

    if not k_tiled:
        # ---- weights resident across all M tiles -------------------------
        grid = (num_m,)
        in_specs = [
            pl.BlockSpec((tile_m, dim_p), lambda i: (i, 0)),   # x tile
            pl.BlockSpec((dim_p, hid_p), lambda i: (0, 0)),    # W1 (resident)
            pl.BlockSpec((1, hid_p), lambda i: (0, 0)),        # b1
            pl.BlockSpec((hid_p, dim_p), lambda i: (0, 0)),    # W2 (resident)
            pl.BlockSpec((1, dim_p), lambda i: (0, 0)),        # b2
        ]
        out_specs = pl.BlockSpec((tile_m, dim_p), lambda i: (i, 0))
        kernel = _ffn_kernel_resident
        scratch = []
        dims = ("parallel",)
        bytes_accessed = (xp.size * w_itemsize
                          + (w1p.size + w2p.size) * w_itemsize
                          + (b1p.size + b2p.size) * 4
                          + m_p * dim_p * out_itemsize)
    else:
        # ---- hidden axis K-tiled (weights re-streamed per M tile) --------
        num_k = hid_p // tile_h
        grid = (num_m, num_k)
        in_specs = [
            pl.BlockSpec((tile_m, dim_p), lambda i, k: (i, 0)),   # x tile
            pl.BlockSpec((dim_p, tile_h), lambda i, k: (0, k)),   # W1 chunk
            pl.BlockSpec((1, tile_h), lambda i, k: (0, k)),       # b1 chunk
            pl.BlockSpec((tile_h, dim_p), lambda i, k: (k, 0)),   # W2 chunk
            pl.BlockSpec((1, dim_p), lambda i, k: (0, 0)),        # b2
        ]
        out_specs = pl.BlockSpec((tile_m, dim_p), lambda i, k: (i, 0))
        if out_dtype == jnp.float32:
            kernel = _ffn_kernel_ktiled_f32out
            scratch = []
        else:
            kernel = _ffn_kernel_ktiled_acc
            scratch = [pltpu.VMEM((tile_m, dim_p), jnp.float32)]
        dims = ("parallel", "arbitrary")
        bytes_accessed = (xp.size * w_itemsize
                          + num_m * ((w1p.size + w2p.size) * w_itemsize
                                     + b1p.size * 4)
                          + b2p.size * 4
                          + m_p * dim_p * out_itemsize)

    out = pl.pallas_call(
        kernel,
        out_shape=jax.ShapeDtypeStruct((m_p, dim_p), out_dtype),
        grid_spec=pltpu.PrefetchScalarGridSpec(
            num_scalar_prefetch=0,
            grid=grid,
            in_specs=in_specs,
            out_specs=out_specs,
            scratch_shapes=scratch,
        ),
        compiler_params=pltpu.CompilerParams(
            dimension_semantics=dims,
            vmem_limit_bytes=int(vmem_limit),
        ),
        cost_estimate=pl.CostEstimate(
            flops=int(flops), transcendentals=0,
            bytes_accessed=int(bytes_accessed)),
    )(xp, w1p, b1p, w2p, b2p)

    return out[:m, :dim]


def feed_forward(x, params):
    """x: (..., dim); params from prepare_params(). Returns same shape/dtype."""
    w1p, b1p, w2p, b2p = params
    orig_shape = x.shape
    dim = orig_shape[-1]
    dim_p, hid_p = w1p.shape
    assert dim <= dim_p, "x feature dim does not match prepared params"

    x2d = x.reshape(-1, dim)
    m = x2d.shape[0]
    out_itemsize = jnp.dtype(x.dtype).itemsize

    budget, capacity = _vmem_budget()
    k_tiled, tile_m, tile_h, needed = _select_tiles(
        m, dim_p, hid_p, out_itemsize, budget)

    vmem_limit = int(min(max(needed + needed // 4, 32 * _MIB),
                         capacity - 2 * _MIB))
    vmem_limit = max(vmem_limit, 16 * _MIB)

    out2d = _ffn_pallas(x2d, w1p, b1p, w2p, b2p,
                        tile_m=int(tile_m), tile_h=int(tile_h),
                        k_tiled=bool(k_tiled), vmem_limit=vmem_limit)
    return out2d.reshape(orig_shape)


def init_params(key, dim, hidden_dim, dtype=jnp.float32):
    k1, k2, k3, k4 = jax.random.split(key, 4)
    # deterministic small-scale init (synthetic; not a checkpoint load)
    w1 = jax.random.normal(k1, (dim, hidden_dim), dtype) * (1.0 / jnp.sqrt(dim))
    b1 = jax.random.normal(k2, (hidden_dim,), dtype) * 0.01
    w2 = jax.random.normal(k3, (hidden_dim, dim), dtype) * (1.0 / jnp.sqrt(hidden_dim))
    b2 = jax.random.normal(k4, (dim,), dtype) * 0.01
    return w1, b1, w2, b2


if __name__ == "__main__":
    key = jax.random.PRNGKey(0)
    batch, seq, dim, hidden_dim = 2, 8, 32, 64

    kx, kp = jax.random.split(key)
    x = jax.random.normal(kx, (batch, seq, dim), jnp.float32)
    w1, b1, w2, b2 = init_params(kp, dim, hidden_dim)

    # Weight cast + pad hoisted out of the per-call path (done once).
    params = prepare_params(w1, b1, w2, b2, compute_dtype=jnp.bfloat16)

    y = feed_forward(x, params)
    y = jax.block_until_ready(y)

    # pure-JAX f32 reference (dropout p=0.0 -> identity). Kernel uses bf16
    # MXU operands with f32 accumulation, hence the looser tolerance.
    ref = jnp.maximum(x @ w1 + b1, 0.0) @ w2 + b2
    assert y.shape == x.shape
    assert y.dtype == x.dtype
    assert jnp.allclose(y, ref, atol=5e-2, rtol=5e-2), "mismatch vs reference"

    print("KERNEL_OK")
</pallas_src>

<mosaic_0001>
module attributes {stable_mosaic.version = 11 : i64} {
  func.func @_ffn_kernel_resident(%arg0: i32, %arg1: memref<16x128xbf16, #tpu.memory_space<vmem>>, %arg2: memref<128x128xbf16, #tpu.memory_space<vmem>>, %arg3: memref<1x128xf32, #tpu.memory_space<vmem>>, %arg4: memref<128x128xbf16, #tpu.memory_space<vmem>>, %arg5: memref<1x128xf32, #tpu.memory_space<vmem>>, %arg6: memref<16x128xf32, #tpu.memory_space<vmem>>) attributes {dimension_semantics = [#tpu.dimension_semantics<parallel>], iteration_bounds = array<i64: 1>, scalar_prefetch = 0 : i64, scratch_operands = 0 : i64, tpu.core_type = #tpu.core_type<tc>, window_params = [{transform_indices = @transform_0, window_bounds = array<i64: 16, 128>}, {pipeline_mode = #tpu.pipeline_mode<synchronous>, transform_indices = @transform_1, window_bounds = array<i64: 128, 128>}, {pipeline_mode = #tpu.pipeline_mode<synchronous>, transform_indices = @transform_2, window_bounds = array<i64: 1, 128>}, {pipeline_mode = #tpu.pipeline_mode<synchronous>, transform_indices = @transform_3, window_bounds = array<i64: 128, 128>}, {pipeline_mode = #tpu.pipeline_mode<synchronous>, transform_indices = @transform_4, window_bounds = array<i64: 1, 128>}, {transform_indices = @transform_5, window_bounds = array<i64: 16, 128>}]} {
    %c0 = arith.constant 0 : index
    %c0_0 = arith.constant 0 : index
    %0 = vector.load %arg1[%c0, %c0_0] : memref<16x128xbf16, #tpu.memory_space<vmem>>, vector<16x128xbf16>
    %c0_1 = arith.constant 0 : index
    %c0_2 = arith.constant 0 : index
    %1 = vector.load %arg2[%c0_1, %c0_2] : memref<128x128xbf16, #tpu.memory_space<vmem>>, vector<128x128xbf16>
    %cst = arith.constant dense<0.000000e+00> : vector<16x128xf32>
    %2 = tpu.matmul %0, %1, %cst {dimension_numbers = #tpu.dot_dimension_numbers<[1], [0], [0], [1], [0, 0, 1, 1], [], []>} : vector<16x128xbf16>, vector<128x128xbf16>, vector<16x128xf32> -> vector<16x128xf32>
    %c0_3 = arith.constant 0 : index
    %c0_4 = arith.constant 0 : index
    %3 = vector.load %arg3[%c0_3, %c0_4] : memref<1x128xf32, #tpu.memory_space<vmem>>, vector<1x128xf32>
    %4 = vector.broadcast %3 : vector<1x128xf32> to vector<16x128xf32>
    %5 = arith.addf %2, %4 : vector<16x128xf32>
    %cst_5 = arith.constant 0.000000e+00 : f32
    %6 = vector.broadcast %cst_5 : f32 to vector<16x128xf32>
    %7 = arith.maximumf %5, %6 : vector<16x128xf32>
    %8 = arith.truncf %7 : vector<16x128xf32> to vector<16x128xbf16>
    %c0_6 = arith.constant 0 : index
    %c0_7 = arith.constant 0 : index
    %9 = vector.load %arg4[%c0_6, %c0_7] : memref<128x128xbf16, #tpu.memory_space<vmem>>, vector<128x128xbf16>
    %cst_8 = arith.constant dense<0.000000e+00> : vector<16x128xf32>
    %10 = tpu.matmul %8, %9, %cst_8 {dimension_numbers = #tpu.dot_dimension_numbers<[1], [0], [0], [1], [0, 0, 1, 1], [], []>} : vector<16x128xbf16>, vector<128x128xbf16>, vector<16x128xf32> -> vector<16x128xf32>
    %c0_9 = arith.constant 0 : index
    %c0_10 = arith.constant 0 : index
    %11 = vector.load %arg5[%c0_9, %c0_10] : memref<1x128xf32, #tpu.memory_space<vmem>>, vector<1x128xf32>
    %12 = vector.broadcast %11 : vector<1x128xf32> to vector<16x128xf32>
    %13 = arith.addf %10, %12 : vector<16x128xf32>
    %c0_11 = arith.constant 0 : index
    %c0_12 = arith.constant 0 : index
    %14 = vector.load %arg6[%c0_11, %c0_12] : memref<16x128xf32, #tpu.memory_space<vmem>>, vector<16x128xf32>
    tpu.vector_store %arg6[%c0_11, %c0_12], %13 {strides = array<i32>} : memref<16x128xf32, #tpu.memory_space<vmem>>, vector<16x128xf32>,
    return
  }
  func.func @transform_0(%arg0: i32) -> (i32, i32) {
    %c0_i32 = arith.constant 0 : i32
    %c0_i32_0 = arith.constant 0 : i32
    return %arg0, %c0_i32 : i32, i32
  }
  func.func @transform_1(%arg0: i32) -> (i32, i32) {
    %c0_i32 = arith.constant 0 : i32
    %c0_i32_0 = arith.constant 0 : i32
    %c0_i32_1 = arith.constant 0 : i32
    return %c0_i32, %c0_i32_0 : i32, i32
  }
  func.func @transform_2(%arg0: i32) -> (i32, i32) {
    %c0_i32 = arith.constant 0 : i32
    %c0_i32_0 = arith.constant 0 : i32
    %c0_i32_1 = arith.constant 0 : i32
    return %c0_i32, %c0_i32_0 : i32, i32
  }
  func.func @transform_3(%arg0: i32) -> (i32, i32) {
    %c0_i32 = arith.constant 0 : i32
    %c0_i32_0 = arith.constant 0 : i32
    %c0_i32_1 = arith.constant 0 : i32
    return %c0_i32, %c0_i32_0 : i32, i32
  }
  func.func @transform_4(%arg0: i32) -> (i32, i32) {
    %c0_i32 = arith.constant 0 : i32
    %c0_i32_0 = arith.constant 0 : i32
    %c0_i32_1 = arith.constant 0 : i32
    return %c0_i32, %c0_i32_0 : i32, i32
  }
  func.func @transform_5(%arg0: i32) -> (i32, i32) {
    %c0_i32 = arith.constant 0 : i32
    %c0_i32_0 = arith.constant 0 : i32
    return %arg0, %c0_i32 : i32, i32
  }
}

</mosaic_0001>

<bundles_post_ra>
// kernel: _ffn_pallas.1
= control target key start
LH: loop header
LB: loop body
LE: loop exit
PB: predicated region body
PF: predicated region fallthrough
CT: control target
= control target key end

     0   :  { %10 = vsyncpa [#allocation3], 0  ;;  %s564_s0 = inlined_call_operand.vmem [shape: bf16[16,128], index: 0, kind: input, shape index: {}]   ;;  %s565_s1 = inlined_call_operand.hbm [shape: bf16[128,128], index: 1, kind: input, shape index: {}]   ;;  %s566_s2 = inlined_call_operand.vmem [shape: f32[1,128], index: 2, kind: input, shape index: {}]   ;;  %s567_s3 = inlined_call_operand.hbm [shape: bf16[128,128], index: 3, kind: input, shape index: {}]   ;;  %s568_s4 = inlined_call_operand.vmem [shape: f32[1,128], index: 4, kind: input, shape index: {}]   ;;  %s569_s5 = inlined_call_operand.hbm [shape: f32[16,128], index: 5, kind: output, shape index: {}]  }
   0x1   :  { %11 = vsyncpa [#allocation6], 0 }
   0x2   :  { %12 = vsyncpa [#allocation4], 0  ;;  %s480_s18 = smov [#allocation2]   ;;  %s408_s22 = scalar_lea.hbm %s565_s1, 1024 }
   0x3   :  { %s20_s19 = sshll.u32 %s480_s18, 4  ;;  %p409_p0 = scmp.ne.s32.totalorder %s565_s1, %s408_s22  ;;  %s21_s19 = int_to_ptr.vmem [resolvable:$true] %s20_s19 }
   0x4   :  { %p412_p1 = scmp.lt.u32.totalorder %s408_s22, %s565_s1 }
   0x6   :  { %p414_p2 = pnand %p412_p1, %p409_p0 }
   0x8   :  { %417 = shalt.err (!%p414_p2)
}
   0x9   :  { %s418_s27 = scalar_lea.vmem %s21_s19, 1024  ;;  %p423_p4 = scmp.lt.s32.totalorder %s21_s19, %s21_s19 }
   0xa   :  { %p419_p3 = scmp.ne.s32.totalorder %s21_s19, %s418_s27  ;;  %p424_p5 = scmp.lt.s32.totalorder %s418_s27, %s418_s27 }
   0xc   :  { %p425_p6 = por %p424_p5, %p423_p4 }
   0xe   :  { %p426_p7 = pnand %p425_p6, %p419_p3 }
  0x10   :  { %429 = shalt.err (!%p426_p7)
}
  0x11   :  { %s481_s28 = smov 64   ;;  %s482_s29 = smov 4  }
  0x12   :  { %26 = dma.hbm_to_vmem [thread:$0]  %s565_s1, 1024, %s21_s19, [#allocation3], %s481_s28, %s481_s28, %s482_s29  }
  0x13   :  { %s483_s7 = smov [#allocation5]   ;;  %s430_s11 = scalar_lea.hbm %s567_s3, 1024 }
  0x14   :  { %s34_s8 = sshll.u32 %s483_s7, 4  ;;  %p431_p8 = scmp.ne.s32.totalorder %s567_s3, %s430_s11  ;;  %s35_s8 = int_to_ptr.vmem [resolvable:$true] %s34_s8 }
  0x15   :  { %p434_p9 = scmp.lt.u32.totalorder %s430_s11, %s567_s3 }
  0x17   :  { %p436_p10 = pnand %p434_p9, %p431_p8 }
  0x19   :  { %439 = shalt.err (!%p436_p10)
}
  0x1a   :  { %s440_s16 = scalar_lea.vmem %s35_s8, 1024  ;;  %p445_p12 = scmp.lt.s32.totalorder %s35_s8, %s35_s8 }
  0x1b   :  { %p441_p11 = scmp.ne.s32.totalorder %s35_s8, %s440_s16  ;;  %p446_p13 = scmp.lt.s32.totalorder %s440_s16, %s440_s16 }
  0x1d   :  { %p447_p0 = por %p446_p13, %p445_p12 }
  0x1f   :  { %p448_p1 = pnand %p447_p0, %p441_p11 }
  0x21   :  { %451 = shalt.err (!%p448_p1)
}
  0x22   :  { %40 = dma.hbm_to_vmem [thread:$0]  %s567_s3, 1024, %s35_s8, [#allocation6], %s481_s28, %s481_s28, %s482_s29  }
  0x23   :  { %474 = dma.done.wait [#allocation3], 1024  }
  0x24   :  { %475 = vsyncadd [#allocation3], 4294966272 }
  0x25   :  { %476 = dma.done.wait [#allocation6], 1024  }
  0x26   :  { %477 = vsyncadd [#allocation6], 4294966272  ;;  %v484_v0 = vmov 0.0   ;;  %vm485_vm0 = vmmov 0   ;;  %v391_v1 = vld [vmem:[#allocation2] sm:$0xff]   ;;  %v392_v2 = vld [vmem:[#allocation2 + $0x8] sm:$0xff]  }
  0x27   :  { %342 = vmatprep.subr.bf16.mxu0 %v484_v0  ;;  %358 = vmatprep.mubr.msk.bf16.mxu0 %vm485_vm0, %v484_v0  ;;  %v393_v3 = vld [vmem:[#allocation2 + $0x10] sm:$0xff]   ;;  %v400_v4 = vld [vmem:[#allocation5] sm:$0xff]   ;;  %v394_v5 = vld [vmem:[#allocation2 + $0x18] sm:$0xff]   ;;  %s486_s22 = smov [#allocation7]  }
  0x28   :  { %362 = vmatprep.subr.bf16.mxu1 %v484_v0  ;;  %378 = vmatprep.mubr.msk.bf16.mxu1 %vm485_vm0, %v484_v0  ;;  %v401_v6 = vld [vmem:[#allocation5 + $0x8] sm:$0xff]   ;;  %v395_v7 = vld [vmem:[#allocation2 + $0x20] sm:$0xff]   ;;  %v402_v8 = vld [vmem:[#allocation5 + $0x10] sm:$0xff]   ;;  %s292_s23 = sshll.u32 %s486_s22, 4  ;;  %s293_s23 = int_to_ptr.vmem [resolvable:$true] %s292_s23 }
  0x29   :  { %343 = vmatpush3.bf16.msra.mxu0 %v391_v1  ;;  %363 = vmatpush3.bf16.msra.mxu1 %v400_v4  ;;  %v396_v9 = vld [vmem:[#allocation2 + $0x28] sm:$0xff]   ;;  %v403_v10 = vld [vmem:[#allocation5 + $0x18] sm:$0xff]   ;;  %v397_v11 = vld [vmem:[#allocation2 + $0x30] sm:$0xff]   ;;  %p457_p3 = scmp.lt.s32.totalorder %s293_s23, %s293_s23 }
  0x2a   :  { %344 = vmatprep.subr.bf16.mxu0 %v484_v0  ;;  %364 = vmatprep.subr.bf16.mxu1 %v484_v0  ;;  %v404_v12 = vld [vmem:[#allocation5 + $0x20] sm:$0xff]   ;;  %v398_v13 = vld [vmem:[#allocation2 + $0x38] sm:$0xff]   ;;  %v405_v14 = vld [vmem:[#allocation5 + $0x28] sm:$0xff]  }
  0x2b   :  { %v399_v15 = vld [vmem:[%s564_s0] sm:$0xff]   ;;  %v407_v17 = vld [vmem:[#allocation5 + $0x38] sm:$0xff]  }
  0x2c   :  { %v406_v16 = vld [vmem:[#allocation5 + $0x30] sm:$0xff]  }
  0x2d   :  { %345 = vmatpush3.bf16.msra.mxu0 %v392_v2  ;;  %365 = vmatpush3.bf16.msra.mxu1 %v401_v6  ;;  %v305_v18 = vld [vmem:[%s566_s2] ss:$0 sm:$0xff]  ;;  %s452_s2 = scalar_lea.vmem %s293_s23, 256 }
  0x2e   :  { %346 = vmatprep.subr.bf16.mxu0 %v484_v0  ;;  %366 = vmatprep.subr.bf16.mxu1 %v484_v0  ;;  %v315_v28 = vld [vmem:[%s568_s4] ss:$0 sm:$0xff]  ;;  %p453_p2 = scmp.ne.s32.totalorder %s293_s23, %s452_s2  ;;  %p458_p4 = scmp.lt.s32.totalorder %s452_s2, %s452_s2 }
  0x30   :  { %p459_p5 = por %p458_p4, %p457_p3 }
  0x31   :  { %347 = vmatpush3.bf16.msra.mxu0 %v393_v3  ;;  %367 = vmatpush3.bf16.msra.mxu1 %v402_v8 }
  0x32   :  { %348 = vmatprep.subr.bf16.mxu0 %v484_v0  ;;  %368 = vmatprep.subr.bf16.mxu1 %v484_v0  ;;  %p460_p6 = pnand %p459_p5, %p453_p2 }
  0x35   :  { %349 = vmatpush3.bf16.msra.mxu0 %v394_v5  ;;  %369 = vmatpush3.bf16.msra.mxu1 %v403_v10 }
  0x36   :  { %350 = vmatprep.subr.bf16.mxu0 %v484_v0  ;;  %370 = vmatprep.subr.bf16.mxu1 %v484_v0 }
  0x39   :  { %351 = vmatpush3.bf16.msra.mxu0 %v395_v7  ;;  %371 = vmatpush3.bf16.msra.mxu1 %v404_v12 }
  0x3a   :  { %352 = vmatprep.subr.bf16.mxu0 %v484_v0  ;;  %372 = vmatprep.subr.bf16.mxu1 %v484_v0 }
  0x3d   :  { %353 = vmatpush3.bf16.msra.mxu0 %v396_v9  ;;  %373 = vmatpush3.bf16.msra.mxu1 %v405_v14 }
  0x3e   :  { %354 = vmatprep.subr.bf16.mxu0 %v484_v0  ;;  %374 = vmatprep.subr.bf16.mxu1 %v484_v0 }
  0x41   :  { %355 = vmatpush3.bf16.msra.mxu0 %v397_v11  ;;  %375 = vmatpush3.bf16.msra.mxu1 %v406_v16 }
  0x42   :  { %356 = vmatprep.subr.bf16.mxu0 %v484_v0  ;;  %376 = vmatprep.subr.bf16.mxu1 %v484_v0 }
  0x45   :  { %357 = vmatpush3.bf16.msra.mxu0 %v398_v13  ;;  %377 = vmatpush3.bf16.msra.mxu1 %v407_v17 }
  0x48   :  { %359 = vmatmul.mubr.bf16.vlgmr.msra.gmra.mrb[0].mxu0 %v399_v15 }
 0x11b   :  { %v163_v19 = vpop.f32.mrb[0].mxu0 }
 0x11c   :  { %v164_v20 = vadd.f32 %v305_v18, %v163_v19  ;;  %v360_v21 = vpop.f32.mrb[1].mxu0 }
 0x11d   :  { %v166_v22 = vpop.f32.mrb[2].mxu0 }
 0x11e   :  { %v167_v23 = vadd.f32 %v305_v18, %v166_v22  ;;  %v361_v24 = vpop.f32.mrb[3].mxu0  ;;  %v170_v25 = vmax.f32 %v164_v20, 0.0 }
 0x120   :  { %v171_v26 = vmax.f32 %v167_v23, 0.0 }
 0x122   :  { %v172_v27 = vpack.c.bf16 %v171_v26, %v170_v25 }
 0x124   :  { %379 = vmatmul.mubr.bf16.vlgmr.msra.gmra.mrb[0].mxu1 %v172_v27 }
 0x1f7   :  { %v278_v29 = vpop.f32.mrb[0].mxu1 }
 0x1f8   :  { %v279_v30 = vadd.f32 %v315_v28, %v278_v29  ;;  %v380_v31 = vpop.f32.mrb[1].mxu1 }
 0x1f9   :  { %v281_v32 = vpop.f32.mrb[2].mxu1 }
 0x1fa   :  { %285 = vst [vmem:[#allocation7] sm:$0xff] %v279_v30  ;;  %v282_v33 = vadd.f32 %v315_v28, %v281_v32  ;;  %v381_v34 = vpop.f32.mrb[3].mxu1 }
 0x1fc   :  { %286 = vst [vmem:[#allocation7 + $0x8] sm:$0xff] %v282_v33 }
 0x1fd   :  { %463 = shalt.err (!%p460_p6)
}
 0x1fe   :  { %s464_s25 = scalar_lea.hbm %s569_s5, 256 }
 0x1ff   :  { %p465_p7 = scmp.ne.s32.totalorder %s569_s5, %s464_s25  ;;  %p468_p8 = scmp.lt.u32.totalorder %s464_s25, %s569_s5 }
 0x201   :  { %p470_p9 = pnand %p468_p8, %p465_p7 }
 0x203   :  { %473 = shalt.err (!%p470_p9)
}
 0x204   :  { %s487_s30 = smov 128   ;;  %s488_s6 = smov 8  }
 0x205   :  { %298 = dma.vmem_to_hbm [thread:$0]  %s293_s23, 256, %s569_s5, [#allocation4], %s487_s30, %s487_s30, %s488_s6  }
 0x206   :  { %478 = dma.done.wait [#allocation4], 256  }
 0x207   :  { %479 = vsyncadd [#allocation4], 4294967040 }
 0x208   :  { %302 = vsyncpa [#allocation3], 1 }
 0x209   :  { %303 = vsyncpa [#allocation6], 1 }
 0x20a   :  { %304 = vsyncpa [#allocation4], 1 }

</bundles_post_ra>
